<compile_context>
chip_gen: v6e
topology: v6e:2x2x1
jax: 0.10.0
libtpu: 0.0.40
codegen_flags: <defaults>
</compile_context>

<pallas_src>
import functools

import jax
import jax.numpy as jnp
import numpy as np
from jax import lax
from jax.experimental import pallas as pl
from jax.experimental.pallas import tpu as pltpu

_VMEM_LIMIT_BYTES = 32 * 1024 * 1024   # safe scoped limit on v5e/v6e (128 MiB) and v7x (64 MiB)
_PER_BLOCK_BYTES = 4 << 20             # per (tb, C) block budget (x4 double-buffered in/out)
_TB_CAP = 4096


def _pick_batch_tile(batch, channels, itemsize, tile_cap=None):
    """Batch tile from a VMEM byte budget; multiple of 8 unless full-extent."""
    cap = _TB_CAP if tile_cap is None else int(tile_cap)
    row_bytes = max(1, channels) * max(1, itemsize)
    tb = _PER_BLOCK_BYTES // row_bytes
    tb = int(min(tb, cap, batch))
    if tb >= batch:
        return batch                    # full-extent block: no (8,128) sublane rule
    return max(8, (tb // 8) * 8)


# -----------------------------------------------------------------------------
# Kernel 1: per-channel moments of (x - running_mean) over the batch dimension.
#   grid = (ncores, ntc): leading "parallel" axis splits the reduction across
#   the two v7x TensorCores (serial no-op on v5e/v6e); trailing "arbitrary"
#   axis iterates batch tiles with a VMEM-resident (1, 1, C) accumulator block.
# -----------------------------------------------------------------------------
def _stats_kernel(x_ref, rm_ref, s1_ref, s2_ref, *, batch, tb, ntc, ncores):
    c = pl.program_id(0)
    i = pl.program_id(1)

    @pl.when(i == 0)
    def _init():
        s1_ref[...] = jnp.zeros_like(s1_ref)
        s2_ref[...] = jnp.zeros_like(s2_ref)

    x = x_ref[...].astype(jnp.float32)
    xc = x - rm_ref[...]                # center by running mean (better numerics)

    def accumulate(v):
        s1_ref[...] += jnp.sum(v, axis=0, keepdims=True)[None]
        s2_ref[...] += jnp.sum(v * v, axis=0, keepdims=True)[None]

    if batch % tb != 0:
        # Mask only the final (partial) tile; all other tiles skip the VPU mask.
        is_last = jnp.logical_and(c == ncores - 1, i == ntc - 1)

        @pl.when(is_last)
        def _masked():
            row = (c * ntc + i) * tb + lax.broadcasted_iota(jnp.int32, xc.shape, 0)
            accumulate(jnp.where(row < batch, xc, 0.0))

        @pl.when(jnp.logical_not(is_last))
        def _full():
            accumulate(xc)
    else:
        accumulate(xc)


def _batch_moments(x, running_mean, tile_cap=None):
    """Per-channel (mean, unbiased var) over the batch dim of a (B, C) array."""
    B, C = x.shape
    isz = jnp.dtype(x.dtype).itemsize
    tb = _pick_batch_tile(B, C, isz, tile_cap)
    nt = -(-B // tb)                                   # ceil div
    ncores = 2 if (nt >= 2 and nt % 2 == 0) else 1     # v7x dual-TC split
    ntc = nt // ncores

    rm = running_mean.astype(jnp.float32).reshape(1, C)

    cost = pl.CostEstimate(
        flops=3 * B * C, transcendentals=0,
        bytes_accessed=B * C * isz + (2 * ncores + 1) * C * 4)

    s1, s2 = pl.pallas_call(
        functools.partial(_stats_kernel, batch=B, tb=tb, ntc=ntc, ncores=ncores),
        out_shape=(jax.ShapeDtypeStruct((ncores, 1, C), jnp.float32),
                   jax.ShapeDtypeStruct((ncores, 1, C), jnp.float32)),
        grid_spec=pltpu.PrefetchScalarGridSpec(
            num_scalar_prefetch=0,
            grid=(ncores, ntc),
            in_specs=[pl.BlockSpec((tb, C), lambda c, i: (c * ntc + i, 0)),
                      pl.BlockSpec((1, C), lambda c, i: (0, 0))],      # resident
            out_specs=(pl.BlockSpec((1, 1, C), lambda c, i: (c, 0, 0)),
                       pl.BlockSpec((1, 1, C), lambda c, i: (c, 0, 0)))),
        compiler_params=pltpu.CompilerParams(
            dimension_semantics=("parallel", "arbitrary"),
            vmem_limit_bytes=_VMEM_LIMIT_BYTES),
        cost_estimate=cost,
    )(x, rm)

    n = jnp.float32(B)
    d1 = jnp.sum(s1, axis=(0, 1)) / n                  # mean(x - rm)
    d2 = jnp.sum(s2, axis=(0, 1))                      # sum((x - rm)^2)
    mean = running_mean.astype(jnp.float32) + d1
    var = (d2 - n * d1 * d1) / (n - 1.0)               # unbiased, like torch.var
    return mean, var


# -----------------------------------------------------------------------------
# Kernel 2: per-channel affine  y[b, c] = x[b, c] * scale[c] + shift[c]
#           (forward and reverse normalization both fold into this).
# -----------------------------------------------------------------------------
def _affine_kernel(x_ref, scale_ref, shift_ref, y_ref):
    x = x_ref[...].astype(jnp.float32)
    y_ref[...] = (x * scale_ref[...] + shift_ref[...]).astype(y_ref.dtype)


def _apply_channel_affine(x, scale, shift, tile_cap=None):
    B, C = x.shape
    isz = jnp.dtype(x.dtype).itemsize
    tb = _pick_batch_tile(B, C, isz, tile_cap)
    nt = -(-B // tb)

    sp = scale.astype(jnp.float32).reshape(1, C)
    hp = shift.astype(jnp.float32).reshape(1, C)

    cost = pl.CostEstimate(flops=2 * B * C, transcendentals=0,
                           bytes_accessed=2 * B * C * isz + 2 * C * 4)

    return pl.pallas_call(
        _affine_kernel,
        out_shape=jax.ShapeDtypeStruct((B, C), x.dtype),
        grid_spec=pltpu.PrefetchScalarGridSpec(
            num_scalar_prefetch=0,
            grid=(nt,),
            in_specs=[pl.BlockSpec((tb, C), lambda i: (i, 0)),
                      pl.BlockSpec((1, C), lambda i: (0, 0)),   # resident params
                      pl.BlockSpec((1, C), lambda i: (0, 0))],
            out_specs=pl.BlockSpec((tb, C), lambda i: (i, 0))),
        compiler_params=pltpu.CompilerParams(
            dimension_semantics=("parallel",),      # v7x megacore; neutral on v5e/v6e
            vmem_limit_bytes=_VMEM_LIMIT_BYTES),
        cost_estimate=cost,
    )(x, sp, hp)


# -----------------------------------------------------------------------------
# Whole-forward / whole-reverse under a single jit (functional state update).
# -----------------------------------------------------------------------------
# TODO(synk): when B*C fits comfortably in VMEM, fuse the stats + affine passes
#             into one pallas_call to avoid reading x from HBM twice in training.
# TODO(synk): add a channel grid axis for very large C so the batch tile stays big.
@functools.partial(jax.jit, static_argnames=("training", "affine", "eps", "decay",
                                             "bn_lag", "tile_cap"))
def _forward_impl(x, logpx, rm, rv, step, weight, bias, *, training, affine,
                  eps, decay, bn_lag, tile_cap):
    rm = rm.astype(jnp.float32)
    rv = rv.astype(jnp.float32)
    used_mean, used_var = rm, rv
    new_rm, new_rv, new_step = rm, rv, step

    if training:
        batch_mean, batch_var = _batch_moments(x, rm, tile_cap)
        if bn_lag > 0.0:
            denom = 1.0 - bn_lag ** (step + 1.0)
            used_mean = (batch_mean - (1.0 - bn_lag) * (batch_mean - rm)) / denom
            used_var = (batch_var - (1.0 - bn_lag) * (batch_var - rv)) / denom
        new_rm = rm - decay * (rm - batch_mean)
        new_rv = rv - decay * (rv - batch_var)
        new_step = step + 1.0

    inv_std = jnp.exp(-0.5 * jnp.log(used_var + eps))
    if affine:
        scale = inv_std * jnp.exp(weight)
        shift = bias - used_mean * scale
    else:
        scale = inv_std
        shift = -used_mean * scale
    y = _apply_channel_affine(x, scale, shift, tile_cap)

    if logpx is None:
        return y, None, new_rm, new_rv, new_step
    ld = -0.5 * jnp.log(used_var + eps)
    if affine:
        ld = ld + weight
    return y, logpx - jnp.sum(ld), new_rm, new_rv, new_step


@functools.partial(jax.jit, static_argnames=("affine", "eps", "tile_cap"))
def _reverse_impl(y, logpy, rm, rv, weight, bias, *, affine, eps, tile_cap):
    rm = rm.astype(jnp.float32)
    rv = rv.astype(jnp.float32)
    std = jnp.exp(0.5 * jnp.log(rv + eps))
    if affine:
        scale = jnp.exp(-weight) * std
        shift = rm - bias * scale
    else:
        scale = std
        shift = rm
    x = _apply_channel_affine(y, scale, shift, tile_cap)
    if logpy is None:
        return x, None
    ld = -0.5 * jnp.log(rv + eps)
    if affine:
        ld = ld + weight
    return x, logpy + jnp.sum(ld)


# -----------------------------------------------------------------------------
# Python wrapper mirroring the nn.Module (buffers held as attributes; state
# updates computed functionally inside jit, assigned back here).
# -----------------------------------------------------------------------------
class MovingBatchNorm1dPallas:
    """JAX/Pallas port of MovingBatchNormNd for (B, num_features) inputs.

    # TODO(synk): only the 1d (channels-last, shape=(1, C)) variant is implemented.
    # TODO(synk): sync=True (torch.distributed all_reduce of batch stats) has no
    #             single-device Pallas equivalent and is not implemented.
    """

    def __init__(self, num_features, eps=1e-4, decay=0.1, bn_lag=0.0,
                 affine=True, sync=False, batch_tile=None):
        del sync
        self.num_features = num_features
        self.eps = float(eps)
        self.decay = float(decay)
        self.bn_lag = float(bn_lag)
        self.affine = bool(affine)
        self.batch_tile = batch_tile        # optional tile cap (None -> auto budget)
        self.training = True
        # buffers / parameters (reset_parameters(): weight = bias = 0)
        self.step = jnp.zeros((), jnp.float32)
        self.running_mean = jnp.zeros((num_features,), jnp.float32)
        self.running_var = jnp.ones((num_features,), jnp.float32)
        self.weight = jnp.zeros((num_features,), jnp.float32)
        self.bias = jnp.zeros((num_features,), jnp.float32)

    @property
    def shape(self):
        return (1, self.num_features)

    def forward(self, x, c=None, logpx=None, reverse=False):
        del c  # unused by the norm layer (API parity with the spec)
        if reverse:
            return self._reverse(x, logpx)
        return self._forward(x, logpx)

    __call__ = forward

    def _forward(self, x, logpx=None):
        y, logp, new_rm, new_rv, new_step = _forward_impl(
            x, logpx, self.running_mean, self.running_var, self.step,
            self.weight, self.bias,
            training=self.training, affine=self.affine, eps=self.eps,
            decay=self.decay, bn_lag=self.bn_lag, tile_cap=self.batch_tile)
        if self.training:
            self.running_mean, self.running_var, self.step = new_rm, new_rv, new_step
        if logpx is None:
            return y
        return y, logp

    def _reverse(self, y, logpy=None):
        x, logp = _reverse_impl(
            y, logpy, self.running_mean, self.running_var, self.weight, self.bias,
            affine=self.affine, eps=self.eps, tile_cap=self.batch_tile)
        if logpy is None:
            return x
        return x, logp


# -----------------------------------------------------------------------------
# Pure-JAX references mirroring the PyTorch code exactly.
# -----------------------------------------------------------------------------
def _reference_forward(x, rm, rv, w, b, step, *, eps, decay, bn_lag, training,
                       affine, logpx=None):
    used_mean, used_var = rm, rv
    new_rm, new_rv, new_step = rm, rv, step
    if training:
        batch_mean = jnp.mean(x, axis=0)
        batch_var = jnp.var(x, axis=0, ddof=1)
        if bn_lag > 0:
            used_mean = batch_mean - (1 - bn_lag) * (batch_mean - used_mean)
            used_mean = used_mean / (1.0 - bn_lag ** (step + 1.0))
            used_var = batch_var - (1 - bn_lag) * (batch_var - used_var)
            used_var = used_var / (1.0 - bn_lag ** (step + 1.0))
        new_rm = rm - decay * (rm - batch_mean)
        new_rv = rv - decay * (rv - batch_var)
        new_step = step + 1.0
    y = (x - used_mean) * jnp.exp(-0.5 * jnp.log(used_var + eps))
    if affine:
        y = y * jnp.exp(w) + b
    if logpx is None:
        return y, (new_rm, new_rv, new_step)
    ld = -0.5 * jnp.log(used_var + eps)
    if affine:
        ld = ld + w
    ld = jnp.broadcast_to(ld, x.shape).sum(-1, keepdims=True)
    return (y, logpx - ld), (new_rm, new_rv, new_step)


def _reference_reverse(y, rm, rv, w, b, *, eps, affine, logpy=None):
    if affine:
        y = (y - b) * jnp.exp(-w)
    x = y * jnp.exp(0.5 * jnp.log(rv + eps)) + rm
    if logpy is None:
        return x
    ld = -0.5 * jnp.log(rv + eps)
    if affine:
        ld = ld + w
    ld = jnp.broadcast_to(ld, x.shape).sum(-1, keepdims=True)
    return x, logpy + ld


if __name__ == "__main__":
    key = jax.random.PRNGKey(0)
    ks = jax.random.split(key, 10)
    eps, decay, bn_lag = 1e-4, 0.1, 0.2

    # --- Case 1: B=64, C=32, tile=16 -> 4 batch tiles, even -> 2-way core split ---
    B, C = 64, 32
    x = jax.random.normal(ks[0], (B, C), jnp.float32)
    logpx = jax.random.normal(ks[1], (B, 1), jnp.float32)

    bn = MovingBatchNorm1dPallas(C, eps=eps, decay=decay, bn_lag=bn_lag,
                                 affine=True, batch_tile=16)
    bn.weight = 0.1 * jax.random.normal(ks[2], (C,), jnp.float32)
    bn.bias = 0.1 * jax.random.normal(ks[3], (C,), jnp.float32)
    bn.running_mean = 0.2 * jax.random.normal(ks[4], (C,), jnp.float32)
    bn.running_var = 1.0 + 0.3 * jax.nn.sigmoid(
        jax.random.normal(ks[5], (C,), jnp.float32))
    rm0, rv0, step0 = bn.running_mean, bn.running_var, bn.step

    bn.training = True
    y, logp = bn(x, logpx=logpx)
    jax.block_until_ready((y, logp))

    (y_ref, logp_ref), (rm_ref, rv_ref, step_ref) = _reference_forward(
        x, rm0, rv0, bn.weight, bn.bias, step0, eps=eps, decay=decay,
        bn_lag=bn_lag, training=True, affine=True, logpx=logpx)
    np.testing.assert_allclose(np.asarray(y), np.asarray(y_ref), rtol=1e-5, atol=1e-4)
    np.testing.assert_allclose(np.asarray(logp), np.asarray(logp_ref), rtol=1e-5, atol=1e-4)
    np.testing.assert_allclose(np.asarray(bn.running_mean), np.asarray(rm_ref),
                               rtol=1e-5, atol=1e-5)
    np.testing.assert_allclose(np.asarray(bn.running_var), np.asarray(rv_ref),
                               rtol=1e-5, atol=1e-4)
    np.testing.assert_allclose(np.asarray(bn.step), np.asarray(step_ref), rtol=0, atol=0)

    # eval-mode forward (uses updated running stats), then reverse
    bn.training = False
    y_eval, lp_eval = bn(x, logpx=logpx)
    (y_eval_ref, lp_eval_ref), _ = _reference_forward(
        x, bn.running_mean, bn.running_var, bn.weight, bn.bias, bn.step,
        eps=eps, decay=decay, bn_lag=bn_lag, training=False, affine=True, logpx=logpx)
    np.testing.assert_allclose(np.asarray(y_eval), np.asarray(y_eval_ref),
                               rtol=1e-5, atol=1e-5)
    np.testing.assert_allclose(np.asarray(lp_eval), np.asarray(lp_eval_ref),
                               rtol=1e-5, atol=1e-5)

    x_rev, lp_rev = bn(y_eval, logpx=lp_eval, reverse=True)
    x_rev_ref, lp_rev_ref = _reference_reverse(
        y_eval, bn.running_mean, bn.running_var, bn.weight, bn.bias,
        eps=eps, affine=True, logpy=lp_eval)
    np.testing.assert_allclose(np.asarray(x_rev), np.asarray(x_rev_ref),
                               rtol=1e-5, atol=1e-5)
    np.testing.assert_allclose(np.asarray(lp_rev), np.asarray(lp_rev_ref),
                               rtol=1e-5, atol=1e-5)

    # --- Case 2: masked partial last tile; B=56 -> 4 tiles (2-core split),
    #             B=40 -> 3 tiles (single core, odd tile count) ---
    for B2 in (56, 40):
        x2 = jax.random.normal(jax.random.fold_in(ks[6], B2), (B2, C), jnp.float32)
        bn2 = MovingBatchNorm1dPallas(C, eps=eps, decay=decay, bn_lag=0.0,
                                      affine=True, batch_tile=16)
        bn2.weight = 0.05 * jax.random.normal(ks[7], (C,), jnp.float32)
        bn2.bias = 0.05 * jax.random.normal(ks[8], (C,), jnp.float32)
        rm20, rv20, step20 = bn2.running_mean, bn2.running_var, bn2.step
        bn2.training = True
        y2 = bn2(x2)
        y2_ref, (rm2_ref, rv2_ref, _) = _reference_forward(
            x2, rm20, rv20, bn2.weight, bn2.bias, step20, eps=eps, decay=decay,
            bn_lag=0.0, training=True, affine=True)
        np.testing.assert_allclose(np.asarray(y2), np.asarray(y2_ref),
                                   rtol=1e-5, atol=1e-4)
        np.testing.assert_allclose(np.asarray(bn2.running_mean), np.asarray(rm2_ref),
                                   rtol=1e-5, atol=1e-5)
        np.testing.assert_allclose(np.asarray(bn2.running_var), np.asarray(rv2_ref),
                                   rtol=1e-5, atol=1e-4)

    # --- Case 3: tiny, non-8 / non-128 aligned (B=10, C=6), affine=False ---
    C3, B3 = 6, 10
    x3 = jax.random.normal(ks[9], (B3, C3), jnp.float32) + 3.0   # non-zero mean
    bn3 = MovingBatchNorm1dPallas(C3, eps=eps, decay=decay, bn_lag=0.0, affine=False)
    rm30, rv30, step30 = bn3.running_mean, bn3.running_var, bn3.step
    bn3.training = True
    y3 = bn3(x3)
    y3_ref, (rm3_ref, rv3_ref, _) = _reference_forward(
        x3, rm30, rv30, jnp.zeros((C3,), jnp.float32), jnp.zeros((C3,), jnp.float32),
        step30, eps=eps, decay=decay, bn_lag=0.0, training=True, affine=False)
    np.testing.assert_allclose(np.asarray(y3), np.asarray(y3_ref), rtol=1e-5, atol=1e-4)
    np.testing.assert_allclose(np.asarray(bn3.running_mean), np.asarray(rm3_ref),
                               rtol=1e-5, atol=1e-5)
    np.testing.assert_allclose(np.asarray(bn3.running_var), np.asarray(rv3_ref),
                               rtol=1e-5, atol=1e-4)
    bn3.training = False
    x3_rev = bn3(y3, reverse=True)

    jax.block_until_ready((y, y_eval, x_rev, y3, x3_rev))
    print("KERNEL_OK")
</pallas_src>

<mosaic_0001>
module attributes {stable_mosaic.version = 11 : i64} {
  func.func @_stats_kernel(%arg0: i32, %arg1: i32, %arg2: memref<16x32xf32, #tpu.memory_space<vmem>>, %arg3: memref<1x32xf32, #tpu.memory_space<vmem>>, %arg4: memref<1x1x32xf32, #tpu.memory_space<vmem>>, %arg5: memref<1x1x32xf32, #tpu.memory_space<vmem>>) attributes {dimension_semantics = [#tpu.dimension_semantics<parallel>, #tpu.dimension_semantics<arbitrary>], iteration_bounds = array<i64: 2, 2>, scalar_prefetch = 0 : i64, scratch_operands = 0 : i64, tpu.core_type = #tpu.core_type<tc>, window_params = [{transform_indices = @transform_0, window_bounds = array<i64: 16, 32>}, {pipeline_mode = #tpu.pipeline_mode<synchronous>, transform_indices = @transform_1, window_bounds = array<i64: 1, 32>}, {transform_indices = @transform_2, window_bounds = array<i64: 1, 1, 32>}, {transform_indices = @transform_3, window_bounds = array<i64: 1, 1, 32>}]} {
    %c0_i32 = arith.constant 0 : i32
    %0 = arith.cmpi eq, %arg1, %c0_i32 : i32
    %1 = arith.extui %0 : i1 to i32
    %c0_i32_0 = arith.constant 0 : i32
    %2 = arith.cmpi ne, %1, %c0_i32_0 : i32
    scf.if %2 {
      %cst_17 = arith.constant 0.000000e+00 : f32
      %20 = vector.broadcast %cst_17 : f32 to vector<1x1x32xf32>
      %c0_18 = arith.constant 0 : index
      %c0_19 = arith.constant 0 : index
      %c0_20 = arith.constant 0 : index
      %21 = vector.load %arg4[%c0_18, %c0_19, %c0_20] : memref<1x1x32xf32, #tpu.memory_space<vmem>>, vector<1x1x32xf32>
      tpu.vector_store %arg4[%c0_18, %c0_19, %c0_20], %20 {strides = array<i32>} : memref<1x1x32xf32, #tpu.memory_space<vmem>>, vector<1x1x32xf32>,
      %cst_21 = arith.constant 0.000000e+00 : f32
      %22 = vector.broadcast %cst_21 : f32 to vector<1x1x32xf32>
      %c0_22 = arith.constant 0 : index
      %c0_23 = arith.constant 0 : index
      %c0_24 = arith.constant 0 : index
      %23 = vector.load %arg5[%c0_22, %c0_23, %c0_24] : memref<1x1x32xf32, #tpu.memory_space<vmem>>, vector<1x1x32xf32>
      tpu.vector_store %arg5[%c0_22, %c0_23, %c0_24], %22 {strides = array<i32>} : memref<1x1x32xf32, #tpu.memory_space<vmem>>, vector<1x1x32xf32>,
    } else {
    }
    %c0 = arith.constant 0 : index
    %c0_1 = arith.constant 0 : index
    %3 = vector.load %arg2[%c0, %c0_1] : memref<16x32xf32, #tpu.memory_space<vmem>>, vector<16x32xf32>
    %c0_2 = arith.constant 0 : index
    %c0_3 = arith.constant 0 : index
    %4 = vector.load %arg3[%c0_2, %c0_3] : memref<1x32xf32, #tpu.memory_space<vmem>>, vector<1x32xf32>
    %5 = vector.broadcast %4 : vector<1x32xf32> to vector<16x32xf32>
    %6 = arith.subf %3, %5 : vector<16x32xf32>
    %c0_4 = arith.constant 0 : index
    %c0_5 = arith.constant 0 : index
    %c0_6 = arith.constant 0 : index
    %7 = vector.load %arg4[%c0_4, %c0_5, %c0_6] : memref<1x1x32xf32, #tpu.memory_space<vmem>>, vector<1x1x32xf32>
    %cst = arith.constant dense<0.000000e+00> : vector<32xf32>
    %8 = vector.multi_reduction <add>, %6, %cst [0] : vector<16x32xf32> to vector<32xf32>
    %9 = vector.shape_cast %8 : vector<32xf32> to vector<1x32xf32>
    %10 = vector.shape_cast %9 : vector<1x32xf32> to vector<1x1x32xf32>
    %11 = arith.addf %7, %10 : vector<1x1x32xf32>
    %c0_7 = arith.constant 0 : index
    %c0_8 = arith.constant 0 : index
    %c0_9 = arith.constant 0 : index
    %12 = vector.load %arg4[%c0_7, %c0_8, %c0_9] : memref<1x1x32xf32, #tpu.memory_space<vmem>>, vector<1x1x32xf32>
    tpu.vector_store %arg4[%c0_7, %c0_8, %c0_9], %11 {strides = array<i32>} : memref<1x1x32xf32, #tpu.memory_space<vmem>>, vector<1x1x32xf32>,
    %c0_10 = arith.constant 0 : index
    %c0_11 = arith.constant 0 : index
    %c0_12 = arith.constant 0 : index
    %13 = vector.load %arg5[%c0_10, %c0_11, %c0_12] : memref<1x1x32xf32, #tpu.memory_space<vmem>>, vector<1x1x32xf32>
    %14 = arith.mulf %6, %6 : vector<16x32xf32>
    %cst_13 = arith.constant dense<0.000000e+00> : vector<32xf32>
    %15 = vector.multi_reduction <add>, %14, %cst_13 [0] : vector<16x32xf32> to vector<32xf32>
    %16 = vector.shape_cast %15 : vector<32xf32> to vector<1x32xf32>
    %17 = vector.shape_cast %16 : vector<1x32xf32> to vector<1x1x32xf32>
    %18 = arith.addf %13, %17 : vector<1x1x32xf32>
    %c0_14 = arith.constant 0 : index
    %c0_15 = arith.constant 0 : index
    %c0_16 = arith.constant 0 : index
    %19 = vector.load %arg5[%c0_14, %c0_15, %c0_16] : memref<1x1x32xf32, #tpu.memory_space<vmem>>, vector<1x1x32xf32>
    tpu.vector_store %arg5[%c0_14, %c0_15, %c0_16], %18 {strides = array<i32>} : memref<1x1x32xf32, #tpu.memory_space<vmem>>, vector<1x1x32xf32>,
    return
  }
  func.func @transform_0(%arg0: i32, %arg1: i32) -> (i32, i32) {
    %c2_i32 = arith.constant 2 : i32
    %0 = arith.muli %arg0, %c2_i32 : i32
    %1 = arith.addi %0, %arg1 : i32
    %c0_i32 = arith.constant 0 : i32
    %c0_i32_0 = arith.constant 0 : i32
    return %1, %c0_i32 : i32, i32
  }
  func.func @transform_1(%arg0: i32, %arg1: i32) -> (i32, i32) {
    %c0_i32 = arith.constant 0 : i32
    %c0_i32_0 = arith.constant 0 : i32
    %c0_i32_1 = arith.constant 0 : i32
    return %c0_i32, %c0_i32_0 : i32, i32
  }
  func.func @transform_2(%arg0: i32, %arg1: i32) -> (i32, i32, i32) {
    %c0_i32 = arith.constant 0 : i32
    %c0_i32_0 = arith.constant 0 : i32
    %c0_i32_1 = arith.constant 0 : i32
    return %arg0, %c0_i32, %c0_i32_0 : i32, i32, i32
  }
  func.func @transform_3(%arg0: i32, %arg1: i32) -> (i32, i32, i32) {
    %c0_i32 = arith.constant 0 : i32
    %c0_i32_0 = arith.constant 0 : i32
    %c0_i32_1 = arith.constant 0 : i32
    return %arg0, %c0_i32, %c0_i32_0 : i32, i32, i32
  }
}

module attributes {stable_mosaic.version = 11 : i64} {
  func.func @_affine_kernel(%arg0: i32, %arg1: memref<16x32xf32, #tpu.memory_space<vmem>>, %arg2: memref<1x32xf32, #tpu.memory_space<vmem>>, %arg3: memref<1x32xf32, #tpu.memory_space<vmem>>, %arg4: memref<16x32xf32, #tpu.memory_space<vmem>>) attributes {dimension_semantics = [#tpu.dimension_semantics<parallel>], iteration_bounds = array<i64: 4>, scalar_prefetch = 0 : i64, scratch_operands = 0 : i64, tpu.core_type = #tpu.core_type<tc>, window_params = [{transform_indices = @transform_0, window_bounds = array<i64: 16, 32>}, {pipeline_mode = #tpu.pipeline_mode<synchronous>, transform_indices = @transform_1, window_bounds = array<i64: 1, 32>}, {pipeline_mode = #tpu.pipeline_mode<synchronous>, transform_indices = @transform_2, window_bounds = array<i64: 1, 32>}, {transform_indices = @transform_3, window_bounds = array<i64: 16, 32>}]} {
    %c0 = arith.constant 0 : index
    %c0_0 = arith.constant 0 : index
    %0 = vector.load %arg1[%c0, %c0_0] : memref<16x32xf32, #tpu.memory_space<vmem>>, vector<16x32xf32>
    %c0_1 = arith.constant 0 : index
    %c0_2 = arith.constant 0 : index
    %1 = vector.load %arg2[%c0_1, %c0_2] : memref<1x32xf32, #tpu.memory_space<vmem>>, vector<1x32xf32>
    %2 = vector.broadcast %1 : vector<1x32xf32> to vector<16x32xf32>
    %3 = arith.mulf %0, %2 : vector<16x32xf32>
    %c0_3 = arith.constant 0 : index
    %c0_4 = arith.constant 0 : index
    %4 = vector.load %arg3[%c0_3, %c0_4] : memref<1x32xf32, #tpu.memory_space<vmem>>, vector<1x32xf32>
    %5 = vector.broadcast %4 : vector<1x32xf32> to vector<16x32xf32>
    %6 = arith.addf %3, %5 : vector<16x32xf32>
    %c0_5 = arith.constant 0 : index
    %c0_6 = arith.constant 0 : index
    %7 = vector.load %arg4[%c0_5, %c0_6] : memref<16x32xf32, #tpu.memory_space<vmem>>, vector<16x32xf32>
    tpu.vector_store %arg4[%c0_5, %c0_6], %6 {strides = array<i32>} : memref<16x32xf32, #tpu.memory_space<vmem>>, vector<16x32xf32>,
    return
  }
  func.func @transform_0(%arg0: i32) -> (i32, i32) {
    %c0_i32 = arith.constant 0 : i32
    %c0_i32_0 = arith.constant 0 : i32
    return %arg0, %c0_i32 : i32, i32
  }
  func.func @transform_1(%arg0: i32) -> (i32, i32) {
    %c0_i32 = arith.constant 0 : i32
    %c0_i32_0 = arith.constant 0 : i32
    %c0_i32_1 = arith.constant 0 : i32
    return %c0_i32, %c0_i32_0 : i32, i32
  }
  func.func @transform_2(%arg0: i32) -> (i32, i32) {
    %c0_i32 = arith.constant 0 : i32
    %c0_i32_0 = arith.constant 0 : i32
    %c0_i32_1 = arith.constant 0 : i32
    return %c0_i32, %c0_i32_0 : i32, i32
  }
  func.func @transform_3(%arg0: i32) -> (i32, i32) {
    %c0_i32 = arith.constant 0 : i32
    %c0_i32_0 = arith.constant 0 : i32
    return %arg0, %c0_i32 : i32, i32
  }
}

</mosaic_0001>

<bundles_post_ra>
// kernel: _forward_impl.2
= control target key start
LH: loop header
LB: loop body
LE: loop exit
PB: predicated region body
PF: predicated region fallthrough
CT: control target
= control target key end

     0   :  { %s449_s12 = smov 0   ;;  %s451_s13 = smov 0   ;;  %s516_s0 = inlined_call_operand.vmem [shape: f32[64,32], index: 0, kind: input, shape index: {}]   ;;  %s517_s1 = inlined_call_operand.vmem [shape: f32[1,32], index: 1, kind: input, shape index: {}]   ;;  %s518_s2 = inlined_call_operand.vmem [shape: f32[2,1,32], index: 2, kind: output, shape index: {0}]   ;;  %s519_s3 = inlined_call_operand.vmem [shape: f32[2,1,32], index: 3, kind: output, shape index: {1}]  }
   0x1   :  { %s453_s14 = smov 0   ;;  %s455_s15 = smov 0  }
   0x2   :  { %s457_s16 = smov 0  }
   0x3 LB: > { %s23_s17 = sadd.s32 1, %s418_s14  ;;  %s26_s18 = sadd.s32 1, %s422_s15  ;;  %s426_s16 = sphi %s457_s16, %s14_s16   ;;  %s422_s15 = sphi %s455_s15, %s523_s15   ;;  %s418_s14 = sphi %s453_s14, %s522_s14   ;;  %s414_s13 = sphi %s451_s13, %s521_s13   ;;  %s410_s12 = sphi %s449_s12, %s520_s12  }
   0x4   : > { %p24_p0 = scmp.ge.s32.totalorder %s23_s17, 2  ;;  %p339_p1 = scmp.ge.s32.totalorder %s426_s16, 1 }
   0x5   : > { %p161_p2 = scmp.lt.s32.totalorder %s426_s16, 5 }
   0x6   : > { %s525_s17 = smov (%p24_p0, %s23_s17), 0  ;;  %s527_s18 = smov (!%p24_p0, %s26_s18), %s422_s15 }
   0x7   : > { %p162_p3 = pnand %p339_p1, %p161_p2  ;;  %p28_p4 = scmp.ge.s32.totalorder %s527_s18, 2 }
   0x8   : > { %s340_s19 = sshll.u32 (!%p162_p3), %s414_s13, 1  ;;  %p198_p5 = scmp.lt.s32.totalorder (!%p162_p3), %s414_s13, 1 }
   0x9   : > { %s529_s18 = smov (%p28_p4, %s527_s18), 0  ;;  %165 = sbr.rel (%p162_p3) target bundleno = 47 (0x2f), region = 28 }
   0xa   : > { %s189_s20 = sadd.s32 (!%p162_p3), %s410_s12, %s340_s19  ;;  %p343_p7 = scmp.ne.s32.totalorder (!%p162_p3), %s410_s12, 0 }
   0xb   : > { %s341_s21 = sshll.u32 (!%p162_p3), %s189_s20, 1 }
   0xc   : > { %p191_p6 = scmp.lt.s32.totalorder (!%p162_p3), %s341_s21, 7 }
   0xe   : > { %s531_s13 = smov (!%p198_p5, %s414_s13), 1  ;;  %s533_s21 = smov (!%p191_p6, %s341_s21), 7 }
   0xf   : > { %s482_s24 = scalar_lea.vmem %s518_s2, %s531_s13  ;;  %s487_s27 = scalar_lea.vmem %s519_s3, %s531_s13 }
  0x10   : > { %s342_s28 = sshll.u32 %s533_s21, 3  ;;  %207 = sbr.rel (%p343_p7) target bundleno = 23 (0x17), region = 32 }
  0x11   : > { %s194_s4 = scalar_lea.vmem %s516_s0, %s342_s28 }
  0x15   : > { %vm208_vm0 = vcmask 253952   ;;  %v428_v0 = vmov 0.0  }
  0x16   : > { %209 = vst.msk [vmem:[%s482_s24] sm:$0x1] %vm208_vm0, %v428_v0  ;;  %210 = vst.msk [vmem:[%s487_s27] sm:$0x1] %vm208_vm0, %v428_v0 }
  0x17 PF: > { %v211_v1 = vld [vmem:[%s194_s4] sm:$0xff]  ;;  %v212_v2 = vld [vmem:[%s194_s4 + $0x8] sm:$0xff]  ;;  %vm223_vm1 = vcmask 261120   ;;  %vm234_vm2 = vcmask 253952  }
  0x18   : > { %v344_v3 = vld [vmem:[%s517_s1] ss:$0 sm:$0xff] }
  0x19   : > { %v220_v4 = vsub.f32 %v211_v1, %v344_v3  ;;  %v221_v5 = vsub.f32 %v212_v2, %v344_v3 }
  0x1b   : > { %v224_v6 = vsel %vm223_vm1, %v220_v4, 0.0  ;;  %v225_v7 = vsel %vm223_vm1, %v221_v5, 0.0  ;;  %v237_v8 = vmul.f32 %v220_v4, %v220_v4  ;;  %v238_v9 = vmul.f32 %v221_v5, %v221_v5 }
  0x1c   : > { %v226_v10 = vadd.f32 %v225_v7, %v224_v6 }
  0x1d   : > { %v239_v11 = vsel %vm223_vm1, %v237_v8, 0.0  ;;  %v240_v12 = vsel %vm223_vm1, %v238_v9, 0.0  ;;  %v222_v23 = vld [vmem:[%s482_s24] sm:$0x1] }
  0x1e   : > { %v227_v13 = vrot.slane %v226_v10, 4  ;;  %v241_v14 = vadd.f32 %v240_v12, %v239_v11  ;;  %v236_v26 = vld [vmem:[%s487_s27] sm:$0x1] }
  0x20   : > { %v228_v15 = vadd.f32 %v227_v13, %v226_v10  ;;  %v242_v16 = vrot.slane %v241_v14, 4 }
  0x22   : > { %v229_v17 = vrot.slane %v228_v15, 2  ;;  %v243_v18 = vadd.f32 %v242_v16, %v241_v14 }
  0x24   : > { %v230_v19 = vadd.f32 %v229_v17, %v228_v15  ;;  %v244_v20 = vrot.slane %v243_v18, 2 }
  0x26   : > { %v231_v21 = vrot.slane %v230_v19, 1  ;;  %v245_v22 = vadd.f32 %v244_v20, %v243_v18 }
  0x28   : > { %v232_v24 = vadd.f32 %v231_v21, %v230_v19  ;;  %v246_v25 = vrot.slane %v245_v22, 1 }
  0x2a   : > { %v233_v27 = vadd.f32 %v232_v24, %v222_v23  ;;  %v247_v28 = vadd.f32 %v246_v25, %v245_v22 }
  0x2c   : > { %235 = vst.msk [vmem:[%s482_s24] sm:$0x1] %vm234_vm2, %v233_v27  ;;  %v248_v29 = vadd.f32 %v247_v28, %v236_v26 }
  0x2e   : > { %249 = vst.msk [vmem:[%s487_s27] sm:$0x1] %vm234_vm2, %v248_v29 }
  0x2f PF: > { %s14_s16 = sadd.s32 1, %s426_s16   ;;  %s520_s12 = smov %s418_s14 }
  0x30   : > { %p11_p8 = scmp.ge.s32.totalorder %s14_s16, 6   ;;  %s521_s13 = smov %s422_s15 }
  0x31   : > { %s522_s14 = smov %s525_s17  ;;  %s523_s15 = smov %s529_s18 }
  0x32   :  { %13 = sbr.rel (!%p11_p8) target bundleno = 3 (0x3), region = 74 }

// kernel: _forward_impl.3
= control target key start
LH: loop header
LB: loop body
LE: loop exit
PB: predicated region body
PF: predicated region fallthrough
CT: control target
= control target key end

     0   :  { %s302_s12 = smov 0   ;;  %s319_s0 = inlined_call_operand.vmem [shape: f32[64,32], index: 0, kind: input, shape index: {}]   ;;  %s320_s1 = inlined_call_operand.vmem [shape: f32[1,32], index: 1, kind: input, shape index: {}]   ;;  %s321_s2 = inlined_call_operand.vmem [shape: f32[1,32], index: 2, kind: input, shape index: {}]   ;;  %s322_s3 = inlined_call_operand.vmem [shape: f32[64,32], index: 3, kind: output, shape index: {}]  }
   0x1 LB: > { %s253_s13 = sadd.s32 4294967295, %s280_s12   ;;  %p257_p0 = scmp.ge.s32.totalorder %s280_s12, 1  ;;  %s280_s12 = sphi %s302_s12, %s13_s12  }
   0x2   : > { %p138_p1 = scmp.lt.s32.totalorder %s280_s12, 5 }
   0x4   : > { %p139_p2 = pnand %p257_p0, %p138_p1 }
   0x5   : > { %s258_s14 = sshll.u32 (!%p139_p2), %s253_s13, 1 }
   0x6   : > { %142 = sbr.rel (%p139_p2) target bundleno = 20 (0x14), region = 32  ;;  %p163_p3 = scmp.lt.s32.totalorder (!%p139_p2), %s258_s14, 7 }
   0xb   : > { %s324_s14 = smov (!%p163_p3, %s258_s14), 7  ;;  %v262_v0 = vld [vmem:[%s320_s1] ss:$0 sm:$0xff]  ;;  %vm194_vm0 = vcmask 261120  }
   0xc   : > { %s259_s15 = sshll.u32 %s324_s14, 3  ;;  %v263_v3 = vld [vmem:[%s321_s2] ss:$0 sm:$0xff] }
   0xd   : > { %s166_s20 = scalar_lea.vmem %s319_s0, %s259_s15  ;;  %s172_s25 = scalar_lea.vmem %s322_s3, %s259_s15 }
   0xe   : > { %v174_v1 = vld [vmem:[%s166_s20] sm:$0xff]  ;;  %v175_v2 = vld [vmem:[%s166_s20 + $0x8] sm:$0xff] }
   0xf   : > { %v183_v4 = vmul.f32 %v262_v0, %v174_v1  ;;  %v184_v5 = vmul.f32 %v262_v0, %v175_v2 }
  0x11   : > { %v192_v6 = vadd.f32 %v263_v3, %v183_v4  ;;  %v193_v7 = vadd.f32 %v263_v3, %v184_v5 }
  0x13   : > { %195 = vst.msk [vmem:[%s172_s25] sm:$0xff] %vm194_vm0, %v192_v6  ;;  %196 = vst.msk [vmem:[%s172_s25 + $0x8] sm:$0xff] %vm194_vm0, %v193_v7 }
  0x14 PF: > { %s13_s12 = sadd.s32 1, %s280_s12  }
  0x15   : > { %p10_p4 = scmp.ge.s32.totalorder %s13_s12, 6  }
  0x17   :  { %12 = sbr.rel (!%p10_p4) target bundleno = 1 (0x1), region = 62 }

</bundles_post_ra>
